<compile_context>
chip_gen: v6e
topology: v6e:2x2x1
jax: 0.10.0
libtpu: 0.0.40
codegen_flags: <defaults>
</compile_context>

<pallas_src>
import functools

import jax
import jax.numpy as jnp
from jax import lax
from jax.experimental import pallas as pl
from jax.experimental.pallas import tpu as pltpu


def _dot_kernel(x_ref, y_ref, o_ref, *, inv_temp):
    # Fold 1/temp into the (small) x tile, in the input dtype so the MXU still
    # sees bf16 when given bf16.
    x = x_ref[...] * jnp.asarray(inv_temp, dtype=x_ref.dtype)
    acc = lax.dot_general(
        x, y_ref[...],
        dimension_numbers=(((1,), (1,)), ((), ())),
        preferred_element_type=jnp.float32,        # f32 accumulator on the MXU
    )                                              # [tm, tn]
    o_ref[...] = acc.astype(o_ref.dtype)


def _cos_kernel(x_ref, y_ref, o_ref, *, inv_temp, eps):
    x = x_ref[...]
    y = y_ref[...]
    # Raw dot products on the MXU (operands kept in their input dtype).
    acc = lax.dot_general(
        x, y,
        dimension_numbers=(((1,), (1,)), ((), ())),
        preferred_element_type=jnp.float32,
    )                                              # [tm, tn]
    # Per-row norms in f32 (cheap: [t, d] elementwise + one lane reduction,
    # hidden under the MXU work).
    xf = x.astype(jnp.float32)
    yf = y.astype(jnp.float32)
    x_norm = jnp.sqrt(jnp.sum(xf * xf, axis=-1, keepdims=True))   # [tm, 1]
    y_norm = jnp.sqrt(jnp.sum(yf * yf, axis=-1, keepdims=True))   # [tn, 1]
    # Fold 1/temp into the x-side inverse norm (tm values, not tm*tn).
    inv_x = jnp.asarray(inv_temp, jnp.float32) / jnp.maximum(x_norm, eps)
    inv_y = 1.0 / jnp.maximum(y_norm, eps)
    out = acc * inv_x * inv_y.T                    # [tm,1] and [1,tn] broadcasts
    o_ref[...] = out.astype(o_ref.dtype)


def _round_up(n, m):
    return ((n + m - 1) // m) * m


def similarity(x, y, temp, method="dot", eps=1e-8, block_m=256, block_n=256):
    """Pallas equivalent of Similarity(temp, method).forward(x, y)."""
    if x.ndim == 1:          # the PyTorch code intends (but no-ops) unsqueeze
        x = x[None, :]
    if y.ndim == 1:
        y = y[None, :]
    bz, d = x.shape
    num, d2 = y.shape
    assert d == d2, (x.shape, y.shape)

    out_dtype = jnp.result_type(x.dtype, y.dtype)

    # Row tile: multiple of 8 (sublanes). Column tile: multiple of 128 (lanes)
    # so output stores are unmasked vst (lane-dense).
    tm = block_m if bz >= block_m else max(8, _round_up(bz, 8))
    tn = block_n if num >= block_n else max(128, _round_up(num, 128))

    pm = _round_up(bz, tm)
    pn = _round_up(num, tn)
    xp = x if pm == bz else jnp.pad(x, ((0, pm - bz), (0, 0)))
    yp = y if pn == num else jnp.pad(y, ((0, pn - num), (0, 0)))

    grid = (pm // tm, pn // tn)

    if method == "dot":
        kernel = functools.partial(_dot_kernel, inv_temp=1.0 / temp)
    elif method == "cos":
        kernel = functools.partial(_cos_kernel, inv_temp=1.0 / temp, eps=eps)
    else:
        raise ValueError(f"unknown method: {method!r}")

    out = pl.pallas_call(
        kernel,
        out_shape=jax.ShapeDtypeStruct((pm, pn), out_dtype),
        grid=grid,
        in_specs=[
            pl.BlockSpec((tm, d), lambda i, j: (i, 0)),
            pl.BlockSpec((tn, d), lambda i, j: (j, 0)),
        ],
        out_specs=pl.BlockSpec((tm, tn), lambda i, j: (i, j)),
        compiler_params=pltpu.CompilerParams(
            dimension_semantics=("parallel", "parallel")),
    )(xp, yp)

    if pm != bz or pn != num:
        out = out[:bz, :num]
    return out


def similarity_ref(x, y, temp, method="dot", eps=1e-8):
    """Plain-JAX reference mirroring the PyTorch module."""
    if method == "dot":
        return (x @ y.T) / temp
    xn = x / jnp.maximum(jnp.linalg.norm(x, axis=-1, keepdims=True), eps)
    yn = y / jnp.maximum(jnp.linalg.norm(y, axis=-1, keepdims=True), eps)
    return (xn @ yn.T) / temp


if __name__ == "__main__":
    key = jax.random.PRNGKey(0)
    k1, k2 = jax.random.split(key)

    bz, num, dim = 8, 16, 32
    temp = 5.0
    x = jax.random.normal(k1, (bz, dim), dtype=jnp.float32)
    y = jax.random.normal(k2, (num, dim), dtype=jnp.float32)

    out_dot = jax.block_until_ready(similarity(x, y, temp, method="dot"))
    out_cos = jax.block_until_ready(similarity(x, y, temp, method="cos"))

    ref_dot = jax.block_until_ready(similarity_ref(x, y, temp, method="dot"))
    ref_cos = jax.block_until_ready(similarity_ref(x, y, temp, method="cos"))

    assert out_dot.shape == (bz, num) and out_cos.shape == (bz, num)
    assert jnp.max(jnp.abs(out_dot - ref_dot)) < 5e-4, ("dot mismatch", out_dot, ref_dot)
    assert jnp.max(jnp.abs(out_cos - ref_cos)) < 5e-4, ("cos mismatch", out_cos, ref_cos)

    print("KERNEL_OK")
</pallas_src>

<mosaic_0001>
module attributes {stable_mosaic.version = 11 : i64} {
  func.func @_dot_kernel(%arg0: i32, %arg1: i32, %arg2: memref<8x32xf32, #tpu.memory_space<vmem>>, %arg3: memref<128x32xf32, #tpu.memory_space<vmem>>, %arg4: memref<8x128xf32, #tpu.memory_space<vmem>>) attributes {dimension_semantics = [#tpu.dimension_semantics<parallel>, #tpu.dimension_semantics<parallel>], iteration_bounds = array<i64: 1, 1>, scalar_prefetch = 0 : i64, scratch_operands = 0 : i64, tpu.core_type = #tpu.core_type<tc>, window_params = [{transform_indices = @transform_0, window_bounds = array<i64: 8, 32>}, {transform_indices = @transform_1, window_bounds = array<i64: 128, 32>}, {transform_indices = @transform_2, window_bounds = array<i64: 8, 128>}]} {
    %c0 = arith.constant 0 : index
    %c0_0 = arith.constant 0 : index
    %0 = vector.load %arg2[%c0, %c0_0] : memref<8x32xf32, #tpu.memory_space<vmem>>, vector<8x32xf32>
    %cst = arith.constant 2.000000e-01 : f32
    %1 = vector.broadcast %cst : f32 to vector<8x32xf32>
    %2 = arith.mulf %0, %1 : vector<8x32xf32>
    %c0_1 = arith.constant 0 : index
    %c0_2 = arith.constant 0 : index
    %3 = vector.load %arg3[%c0_1, %c0_2] : memref<128x32xf32, #tpu.memory_space<vmem>>, vector<128x32xf32>
    %cst_3 = arith.constant dense<0.000000e+00> : vector<8x128xf32>
    %4 = tpu.matmul %2, %3, %cst_3 {dimension_numbers = #tpu.dot_dimension_numbers<[1], [1], [0], [0], [0, 0, 1, 0], [], []>} : vector<8x32xf32>, vector<128x32xf32>, vector<8x128xf32> -> vector<8x128xf32>
    %c0_4 = arith.constant 0 : index
    %c0_5 = arith.constant 0 : index
    %5 = vector.load %arg4[%c0_4, %c0_5] : memref<8x128xf32, #tpu.memory_space<vmem>>, vector<8x128xf32>
    tpu.vector_store %arg4[%c0_4, %c0_5], %4 {strides = array<i32>} : memref<8x128xf32, #tpu.memory_space<vmem>>, vector<8x128xf32>,
    return
  }
  func.func @transform_0(%arg0: i32, %arg1: i32) -> (i32, i32) {
    %c0_i32 = arith.constant 0 : i32
    %c0_i32_0 = arith.constant 0 : i32
    return %arg0, %c0_i32 : i32, i32
  }
  func.func @transform_1(%arg0: i32, %arg1: i32) -> (i32, i32) {
    %c0_i32 = arith.constant 0 : i32
    %c0_i32_0 = arith.constant 0 : i32
    return %arg1, %c0_i32 : i32, i32
  }
  func.func @transform_2(%arg0: i32, %arg1: i32) -> (i32, i32) {
    %c0_i32 = arith.constant 0 : i32
    return %arg0, %arg1 : i32, i32
  }
}

</mosaic_0001>

<bundles_post_ra>
// kernel: tpu_custom_call.1
= control target key start
LH: loop header
LB: loop body
LE: loop exit
PB: predicated region body
PF: predicated region fallthrough
CT: control target
= control target key end

     0   :  { %vm30_vm0 = vcmask 261120   ;;  %v261_v1 = vmov 0.0   ;;  %vm262_vm1 = vmmov 0   ;;  %s350_s0 = inlined_call_operand.vmem [shape: f32[8,32], index: 0, kind: input, shape index: {}]   ;;  %s351_s1 = inlined_call_operand.vmem [shape: f32[128,32], index: 1, kind: input, shape index: {}]   ;;  %s352_s2 = inlined_call_operand.hbm [shape: f32[8,128], index: 2, kind: output, shape index: {}]  }
   0x1   :  { %v29_v0 = vld [vmem:[%s351_s1 + $0x78] sm:$0xff]  ;;  %201 = vmatprep.subr.mxu0 %v261_v1  ;;  %233 = vmatprep.mubr.msk.f32.mxu0 %vm262_vm1, %v261_v1  ;;  %v28_v2 = vld [vmem:[%s351_s1 + $0x70] sm:$0xff] }
   0x2   :  { %202 = vmatpush3.xpose.msk.msra.mxu0 %vm30_vm0, %v29_v0 }
   0x3   :  { %203 = vmatprep.subr.mxu0 %v261_v1 }
   0x4   :  { %7 = vsyncpa [#allocation3], 0  ;;  %v27_v3 = vld [vmem:[%s351_s1 + $0x68] sm:$0xff]  ;;  %v26_v4 = vld [vmem:[%s351_s1 + $0x60] sm:$0xff]  ;;  %s263_s15 = smov [#allocation2]  }
   0x5   :  { %v25_v5 = vld [vmem:[%s351_s1 + $0x58] sm:$0xff]  ;;  %v24_v6 = vld [vmem:[%s351_s1 + $0x50] sm:$0xff]  ;;  %v23_v7 = vld [vmem:[%s351_s1 + $0x48] sm:$0xff]  ;;  %s159_s16 = sshll.u32 %s263_s15, 4  ;;  %s160_s16 = int_to_ptr.vmem [resolvable:$true] %s159_s16 }
   0x6   :  { %204 = vmatpush3.xpose.msk.msra.mxu0 %vm30_vm0, %v28_v2  ;;  %v22_v8 = vld [vmem:[%s351_s1 + $0x40] sm:$0xff]  ;;  %v21_v9 = vld [vmem:[%s351_s1 + $0x38] sm:$0xff]  ;;  %v20_v10 = vld [vmem:[%s351_s1 + $0x30] sm:$0xff]  ;;  %s239_s17 = scalar_lea.vmem %s160_s16, 128  ;;  %p244_p1 = scmp.lt.s32.totalorder %s160_s16, %s160_s16 }
   0x7   :  { %205 = vmatprep.subr.mxu0 %v261_v1  ;;  %v19_v11 = vld [vmem:[%s351_s1 + $0x28] sm:$0xff]  ;;  %v18_v12 = vld [vmem:[%s351_s1 + $0x20] sm:$0xff]  ;;  %v17_v13 = vld [vmem:[%s351_s1 + $0x18] sm:$0xff]  ;;  %p240_p0 = scmp.ne.s32.totalorder %s160_s16, %s239_s17  ;;  %p245_p2 = scmp.lt.s32.totalorder %s239_s17, %s239_s17 }
   0x8   :  { %v16_v14 = vld [vmem:[%s351_s1 + $0x10] sm:$0xff]  ;;  %v15_v15 = vld [vmem:[%s351_s1 + $0x8] sm:$0xff]  ;;  %v12_v16 = vld [vmem:[%s350_s0] sm:$0xff] }
   0x9   :  { %v14_v17 = vld [vmem:[%s351_s1] sm:$0xff]  ;;  %v13_v18 = vmul.f32 0.2, %v12_v16  ;;  %p246_p3 = por %p245_p2, %p244_p1 }
   0xa   :  { %206 = vmatpush3.xpose.msk.msra.mxu0 %vm30_vm0, %v27_v3 }
   0xb   :  { %207 = vmatprep.subr.mxu0 %v261_v1  ;;  %p247_p4 = pnand %p246_p3, %p240_p0 }
   0xe   :  { %208 = vmatpush3.xpose.msk.msra.mxu0 %vm30_vm0, %v26_v4 }
   0xf   :  { %209 = vmatprep.subr.mxu0 %v261_v1 }
  0x12   :  { %210 = vmatpush3.xpose.msk.msra.mxu0 %vm30_vm0, %v25_v5 }
  0x13   :  { %211 = vmatprep.subr.mxu0 %v261_v1 }
  0x16   :  { %212 = vmatpush3.xpose.msk.msra.mxu0 %vm30_vm0, %v24_v6 }
  0x17   :  { %213 = vmatprep.subr.mxu0 %v261_v1 }
  0x1a   :  { %214 = vmatpush3.xpose.msk.msra.mxu0 %vm30_vm0, %v23_v7 }
  0x1b   :  { %215 = vmatprep.subr.mxu0 %v261_v1 }
  0x1e   :  { %216 = vmatpush3.xpose.msk.msra.mxu0 %vm30_vm0, %v22_v8 }
  0x1f   :  { %217 = vmatprep.subr.mxu0 %v261_v1 }
  0x22   :  { %218 = vmatpush3.xpose.msk.msra.mxu0 %vm30_vm0, %v21_v9 }
  0x23   :  { %219 = vmatprep.subr.mxu0 %v261_v1 }
  0x26   :  { %220 = vmatpush3.xpose.msk.msra.mxu0 %vm30_vm0, %v20_v10 }
  0x27   :  { %221 = vmatprep.subr.mxu0 %v261_v1 }
  0x2a   :  { %222 = vmatpush3.xpose.msk.msra.mxu0 %vm30_vm0, %v19_v11 }
  0x2b   :  { %223 = vmatprep.subr.mxu0 %v261_v1 }
  0x2e   :  { %224 = vmatpush3.xpose.msk.msra.mxu0 %vm30_vm0, %v18_v12 }
  0x2f   :  { %225 = vmatprep.subr.mxu0 %v261_v1 }
  0x32   :  { %226 = vmatpush3.xpose.msk.msra.mxu0 %vm30_vm0, %v17_v13 }
  0x33   :  { %227 = vmatprep.subr.mxu0 %v261_v1 }
  0x36   :  { %228 = vmatpush3.xpose.msk.msra.mxu0 %vm30_vm0, %v16_v14 }
  0x37   :  { %229 = vmatprep.subr.mxu0 %v261_v1 }
  0x3a   :  { %230 = vmatpush3.xpose.msk.msra.mxu0 %vm30_vm0, %v15_v15 }
  0x3b   :  { %231 = vmatprep.subr.mxu0 %v261_v1 }
  0x3e   :  { %232 = vmatpush3.xpose.msk.msra.mxu0 %vm30_vm0, %v14_v17 }
  0x41   :  { %234 = vmatmul.mubr.msk.f32.vlgmr.msra.gmra.mxu0 %vm30_vm0, %v13_v18 }
 0x101   :  { %v148_v19 = vpop.f32.mrf.mxu0 }
 0x102   :  { %152 = vst [vmem:[#allocation2] sm:$0xff] %v148_v19 }
 0x103   :  { %v235_v20 = vpop.f32.mrf.mxu0 }
 0x104   :  { %250 = shalt.err (!%p247_p4)
}
 0x105   :  { %162 = dma.vmem_to_hbm [thread:$0]  %s160_s16, 128, %s352_s2, [#allocation3]  }
 0x106   :  { %259 = dma.done.wait [#allocation3], 128  }
 0x107   :  { %260 = vsyncadd [#allocation3], 4294967168 }
 0x108   :  { %166 = vsyncpa [#allocation3], 1 }

</bundles_post_ra>
